<compile_context>
chip_gen: v7x
topology: tpu7x:2x2x1
jax: 0.10.0
libtpu: 0.0.40
codegen_flags: <defaults>
</compile_context>

<pallas_src>
import jax
import jax.numpy as jnp
from jax.experimental import pallas as pl
from jax.experimental.pallas import tpu as pltpu


def _focus_conv_kernel(x_ref, w_ref, b_ref, o_ref):
    # x_ref: (1, C4, TM)  space-to-depth pixels; channels on sublanes, pixels on lanes
    # w_ref: (C2, C4)     1x1 conv weight with folded BN scale
    # b_ref: (C2, 1)      folded BN bias (f32)
    # o_ref: (1, C2, TM)  lane-dense output block (f32)
    acc = jnp.dot(w_ref[...], x_ref[0], preferred_element_type=jnp.float32)
    y = acc + b_ref[...]
    # LeakyReLU(0.1)
    o_ref[0] = jnp.where(y > 0, y, 0.1 * y).astype(o_ref.dtype)


def _pick_pixel_tile(hw, c4, c2, in_bytes, out_bytes, budget_bytes=8 * 1024 * 1024):
    """Pixel-tile width (lane dim). Multiple of 128, or full extent when tiny."""
    if hw <= 512:
        return hw  # block == full array dim is always legal
    per_col = 2 * (c4 * in_bytes + c2 * out_bytes)  # double-buffered in + out
    tm = min(hw, max(128, budget_bytes // per_col))
    return max(128, (tm // 128) * 128)


def focus_forward(x, conv_w, bn_gamma, bn_beta, bn_mean, bn_var, eps=1e-3,
                  compute_dtype=jnp.bfloat16):
    """x: NCHW f32. conv_w: (C2, 4*C1, 1, 1). Returns NCHW (B, C2, H/2, W/2) f32."""
    # --- space-to-depth (plain JAX gather, one HBM pass), matches torch.cat order ---
    patches = jnp.concatenate(
        [x[..., ::2, ::2], x[..., 1::2, ::2], x[..., ::2, 1::2], x[..., 1::2, 1::2]],
        axis=1,
    )
    B, C4, Hp, Wp = patches.shape
    C2 = conv_w.shape[0]
    HW = Hp * Wp

    # (B, C4, Hp*Wp): contiguous (free) reshape. Channels -> sublanes, pixels -> lanes.
    xm = patches.reshape(B, C4, HW).astype(compute_dtype)

    # Fold BN (eval mode) into the weight; keep only the bias.
    scale = bn_gamma / jnp.sqrt(bn_var + eps)
    wm = (conv_w.reshape(C2, C4) * scale[:, None]).astype(compute_dtype)
    bias = (bn_beta - bn_mean * scale).reshape(C2, 1).astype(jnp.float32)

    in_bytes = jnp.dtype(compute_dtype).itemsize
    TM = _pick_pixel_tile(HW, C4, C2, in_bytes, 4)
    grid = (B, pl.cdiv(HW, TM))

    cost = pl.CostEstimate(
        flops=2 * B * HW * C4 * C2,
        transcendentals=0,
        bytes_accessed=(B * HW * C4 * in_bytes      # activations in
                        + C2 * C4 * in_bytes        # weight
                        + C2 * 4                    # bias
                        + B * HW * C2 * 4),         # output
    )

    out = pl.pallas_call(
        _focus_conv_kernel,
        out_shape=jax.ShapeDtypeStruct((B, C2, HW), jnp.float32),
        grid_spec=pltpu.PrefetchScalarGridSpec(
            num_scalar_prefetch=0,
            grid=grid,
            in_specs=[
                pl.BlockSpec((1, C4, TM), lambda b, i: (b, 0, i)),
                pl.BlockSpec((C2, C4), lambda b, i: (0, 0)),
                pl.BlockSpec((C2, 1), lambda b, i: (0, 0)),
            ],
            out_specs=pl.BlockSpec((1, C2, TM), lambda b, i: (b, 0, i)),
        ),
        compiler_params=pltpu.CompilerParams(
            dimension_semantics=("parallel", "parallel")),
        cost_estimate=cost,
    )(xm, wm, bias)

    # (B, C2, Hp*Wp) -> NCHW: free reshape, no transpose needed.
    return out.reshape(B, C2, Hp, Wp)


def _reference(x, conv_w, bn_gamma, bn_beta, bn_mean, bn_var, eps=1e-3):
    patches = jnp.concatenate(
        [x[..., ::2, ::2], x[..., 1::2, ::2], x[..., ::2, 1::2], x[..., 1::2, 1::2]],
        axis=1,
    )
    y = jnp.einsum("bchw,oc->bohw", patches, conv_w.reshape(conv_w.shape[0], -1))
    s = bn_gamma / jnp.sqrt(bn_var + eps)
    y = y * s[None, :, None, None] + (bn_beta - bn_mean * s)[None, :, None, None]
    return jnp.where(y > 0, y, 0.1 * y)


if __name__ == "__main__":
    key = jax.random.PRNGKey(0)
    k_x, k_w, k_g, k_b, k_m, k_v = jax.random.split(key, 6)

    B, C1, H, W = 2, 4, 16, 16   # input NCHW
    C2 = 8                       # output channels of Focus.conv

    x = jax.random.normal(k_x, (B, C1, H, W), dtype=jnp.float32)
    conv_w = jax.random.normal(k_w, (C2, 4 * C1, 1, 1), dtype=jnp.float32) * 0.1
    bn_gamma = 1.0 + 0.1 * jax.random.normal(k_g, (C2,), dtype=jnp.float32)
    bn_beta = 0.1 * jax.random.normal(k_b, (C2,), dtype=jnp.float32)
    bn_mean = 0.1 * jax.random.normal(k_m, (C2,), dtype=jnp.float32)
    bn_var = jnp.abs(jax.random.normal(k_v, (C2,), dtype=jnp.float32)) + 0.5

    ref = _reference(x, conv_w, bn_gamma, bn_beta, bn_mean, bn_var)

    # Exact-precision path (f32 operands): tight tolerance.
    out_f32 = jax.block_until_ready(
        focus_forward(x, conv_w, bn_gamma, bn_beta, bn_mean, bn_var,
                      compute_dtype=jnp.float32))
    assert out_f32.shape == (B, C2, H // 2, W // 2), out_f32.shape
    assert jnp.allclose(out_f32, ref, atol=1e-4, rtol=1e-4), \
        float(jnp.max(jnp.abs(out_f32 - ref)))

    # Default fast path (bf16 operands, f32 MXU accumulation): relaxed tolerance.
    out_bf16 = jax.block_until_ready(
        focus_forward(x, conv_w, bn_gamma, bn_beta, bn_mean, bn_var))
    assert out_bf16.shape == (B, C2, H // 2, W // 2), out_bf16.shape
    assert jnp.allclose(out_bf16, ref, atol=5e-2, rtol=5e-2), \
        float(jnp.max(jnp.abs(out_bf16 - ref)))

    print("KERNEL_OK")
</pallas_src>

<mosaic_0001>
module attributes {stable_mosaic.version = 11 : i64} {
  func.func @_focus_conv_kernel(%arg0: i32, %arg1: i32, %arg2: memref<1x16x64xf32, #tpu.memory_space<vmem>>, %arg3: memref<8x16xf32, #tpu.memory_space<vmem>>, %arg4: memref<8x1xf32, #tpu.memory_space<vmem>>, %arg5: memref<1x8x64xf32, #tpu.memory_space<vmem>>) attributes {dimension_semantics = [#tpu.dimension_semantics<parallel>, #tpu.dimension_semantics<parallel>], iteration_bounds = array<i64: 2, 1>, scalar_prefetch = 0 : i64, scratch_operands = 0 : i64, tpu.core_type = #tpu.core_type<tc>, window_params = [{transform_indices = @transform_0, window_bounds = array<i64: 1, 16, 64>}, {pipeline_mode = #tpu.pipeline_mode<synchronous>, transform_indices = @transform_1, window_bounds = array<i64: 8, 16>}, {pipeline_mode = #tpu.pipeline_mode<synchronous>, transform_indices = @transform_2, window_bounds = array<i64: 8, 1>}, {transform_indices = @transform_3, window_bounds = array<i64: 1, 8, 64>}]} {
    %c0 = arith.constant 0 : index
    %c0_0 = arith.constant 0 : index
    %0 = vector.load %arg3[%c0, %c0_0] : memref<8x16xf32, #tpu.memory_space<vmem>>, vector<8x16xf32>
    %c0_1 = arith.constant 0 : index
    %c0_2 = arith.constant 0 : index
    %c0_3 = arith.constant 0 : index
    %1 = vector.load %arg2[%c0_1, %c0_2, %c0_3] : memref<1x16x64xf32, #tpu.memory_space<vmem>>, vector<1x16x64xf32>
    %2 = vector.shape_cast %1 : vector<1x16x64xf32> to vector<16x64xf32>
    %cst = arith.constant dense<0.000000e+00> : vector<8x64xf32>
    %3 = tpu.matmul %0, %2, %cst {dimension_numbers = #tpu.dot_dimension_numbers<[1], [0], [0], [1], [0, 0, 1, 1], [], []>} : vector<8x16xf32>, vector<16x64xf32>, vector<8x64xf32> -> vector<8x64xf32>
    %c0_4 = arith.constant 0 : index
    %c0_5 = arith.constant 0 : index
    %4 = vector.load %arg4[%c0_4, %c0_5] : memref<8x1xf32, #tpu.memory_space<vmem>>, vector<8x1xf32>
    %5 = vector.broadcast %4 : vector<8x1xf32> to vector<8x64xf32>
    %6 = arith.addf %3, %5 : vector<8x64xf32>
    %cst_6 = arith.constant 0.000000e+00 : f32
    %7 = vector.broadcast %cst_6 : f32 to vector<8x64xf32>
    %8 = arith.cmpf ogt, %6, %7 : vector<8x64xf32>
    %cst_7 = arith.constant 1.000000e-01 : f32
    %9 = vector.broadcast %cst_7 : f32 to vector<8x64xf32>
    %10 = arith.mulf %9, %6 : vector<8x64xf32>
    %11 = arith.select %8, %6, %10 : vector<8x64xi1>, vector<8x64xf32>
    %c0_8 = arith.constant 0 : index
    %c0_9 = arith.constant 0 : index
    %c0_10 = arith.constant 0 : index
    %12 = vector.load %arg5[%c0_8, %c0_9, %c0_10] : memref<1x8x64xf32, #tpu.memory_space<vmem>>, vector<1x8x64xf32>
    %13 = vector.shape_cast %12 : vector<1x8x64xf32> to vector<8x64xf32>
    %14 = vector.shape_cast %11 : vector<8x64xf32> to vector<1x8x64xf32>
    tpu.vector_store %arg5[%c0_8, %c0_9, %c0_10], %14 {strides = array<i32>} : memref<1x8x64xf32, #tpu.memory_space<vmem>>, vector<1x8x64xf32>,
    return
  }
  func.func @transform_0(%arg0: i32, %arg1: i32) -> (i32, i32, i32) {
    %c0_i32 = arith.constant 0 : i32
    %c0_i32_0 = arith.constant 0 : i32
    return %arg0, %c0_i32, %arg1 : i32, i32, i32
  }
  func.func @transform_1(%arg0: i32, %arg1: i32) -> (i32, i32) {
    %c0_i32 = arith.constant 0 : i32
    %c0_i32_0 = arith.constant 0 : i32
    %c0_i32_1 = arith.constant 0 : i32
    return %c0_i32, %c0_i32_0 : i32, i32
  }
  func.func @transform_2(%arg0: i32, %arg1: i32) -> (i32, i32) {
    %c0_i32 = arith.constant 0 : i32
    %c0_i32_0 = arith.constant 0 : i32
    %c0_i32_1 = arith.constant 0 : i32
    return %c0_i32, %c0_i32_0 : i32, i32
  }
  func.func @transform_3(%arg0: i32, %arg1: i32) -> (i32, i32, i32) {
    %c0_i32 = arith.constant 0 : i32
    %c0_i32_0 = arith.constant 0 : i32
    return %arg0, %c0_i32, %arg1 : i32, i32, i32
  }
}

</mosaic_0001>

<bundles_post_ra>
// kernel: tpu_custom_call.1
= control target key start
LH: loop header
LB: loop body
LE: loop exit
PB: predicated region body
PF: predicated region fallthrough
CT: control target
= control target key end

     0   :  { %8 = vsyncpa [#allocation3], 0  ;;  %s810_s0 = inlined_call_operand.hbm [shape: f32[2,16,64], index: 0, kind: input, shape index: {}]   ;;  %s811_s1 = inlined_call_operand.vmem [shape: f32[8,16], index: 1, kind: input, shape index: {}]   ;;  %s812_s2 = inlined_call_operand.vmem [shape: f32[8,1], index: 2, kind: input, shape index: {}]   ;;  %s813_s3 = inlined_call_operand.hbm [shape: f32[2,8,64], index: 3, kind: output, shape index: {}]  }
   0x1   :  { %10 = vsyncpa [#allocation3 + $0x1], 0 }
   0x2   :  { %11 = vsyncpa [#allocation4], 0 }
   0x3   :  { %13 = vsyncpa [#allocation4 + $0x1], 0  ;;  %s630_s12 = smov 0   ;;  %s632_s13 = smov 0  }
   0x4   :  { %s634_s14 = smov 0   ;;  %s636_s15 = smov 0  }
   0x5   :  { %s638_s16 = smov 0   ;;  %s640_s17 = smov 0  }
   0x6 LB: > { %s390_s18 = sadd.s32 4294967295, %s600_s17   ;;  %s391_s19 = sadd.s32 4294967294, %s600_s17   ;;  %s600_s17 = sphi %s640_s17, %s19_s17   ;;  %s596_s16 = sphi %s638_s16, %s828_s16   ;;  %s592_s15 = sphi %s636_s15, %s827_s15   ;;  %s588_s14 = sphi %s634_s14, %s826_s14   ;;  %s584_s13 = sphi %s632_s13, %s825_s13   ;;  %s580_s12 = sphi %s630_s12, %s824_s12  }
   0x7   : > { %s31_s20 = sadd.s32 1, %s596_s16  ;;  %s40_s21 = sadd.s32 1, %s588_s14 }
   0x8   : > { %p33_p0 = scmp.ge.s32.totalorder %s31_s20, 2  ;;  %p47_p1 = scmp.ne.s32.totalorder %s588_s14, %s584_s13 }
   0x9   : > { %p48_p2 = scmp.eq.s32.totalorder %s600_s17, 0  ;;  %p53_p3 = scmp.ne.s32.totalorder %s584_s13, %s580_s12 }
   0xa   : > { %s830_s20 = smov (%p33_p0, %s31_s20), 0  ;;  %p54_p5 = scmp.eq.s32.totalorder %s390_s18, 0 }
   0xb   : > { %p671_p4 = por %p48_p2, %p47_p1  ;;  %s35_s23 = ssub.s32 %s596_s16, %s830_s20 }
   0xc   : > { %p121_p6 = scmp.eq.s32.totalorder %s390_s18, 1  ;;  %p38_p7 = scmp.eq.s32.totalorder %s35_s23, 0 }
   0xd   : > { %p677_p8 = por %p54_p5, %p53_p3  ;;  %p127_p10 = scmp.eq.s32.totalorder %s391_s19, 1 }
   0xe   : > { %p681_p9 = por %p121_p6, %p47_p1  ;;  %p431_p13 = scmp.lt.s32.totalorder %s600_s17, 2 }
   0xf   : > { %s686_s26 = scalar_select %p38_p7, %s588_s14, %s40_s21  }
  0x10   : > { %s817_s25 = scalar_select %p681_p9, 1, 0 }
  0x11   : > { %p688_p11 = por %p127_p10, %p53_p3  ;;  %s153_s28 = sand.u32 1, %s588_s14  }
  0x12   : > { %s394_s29 = sshll.u32 %s153_s28, 4  ;;  %s405_s30 = sshll.u32 %s596_s16, 8 }
  0x13   : > { %s818_s27 = scalar_select %p688_p11, 1, 0 }
  0x14   : > { %s699_s6 = scalar_lea.hbm %s810_s0, %s405_s30  ;;  %s157_s7 = scalar_lea.vmem [#allocation2], %s394_s29 }
  0x15   : > { %s165_s8 = sshll.u32 %s157_s7, 4  ;;  %p705_p0 = pnand %p431_p13, %p671_p4  ;;  %s701_s8 = int_to_ptr.vmem [resolvable:$true] %s165_s8 }
  0x16   : > { %s710_s10 = scalar_lea.sflag [#allocation3], %s153_s28  ;;  %s488_s11 = scalar_lea.hbm %s699_s6, 256 }
  0x17   : > { %p489_p2 = scmp.ne.s32.totalorder %s699_s6, %s488_s11  ;;  %p490_p3 = pneg %p705_p0 }
  0x18   : > { %s493_s21 = scalar_lea.hbm %s810_s0, 512  ;;  %p494_p4 = scmp.lt.u32.totalorder %s699_s6, %s810_s0 }
  0x19   : > { %p491_p5 = pnand %p490_p3, %p489_p2  ;;  %p495_p7 = scmp.lt.u32.totalorder %s493_s21, %s488_s11 }
  0x1a   : > { %p497_p13 = scmp.lt.u32.totalorder %s488_s11, %s699_s6 }
  0x1b   : > { %p492_p6 = pneg %p491_p5  ;;  %p496_p10 = por %p495_p7, %p494_p4 }
  0x1d   : > { %p498_p12 = por %p497_p13, %p496_p10 }
  0x1f   : > { %p499_p1 = pnand %p498_p12, %p492_p6 }
  0x21   : > { %502 = shalt.err (!%p499_p1)
}
  0x22   : > { %s503_s28 = scalar_lea.vmem %s701_s8, 256  ;;  %s602_s29 = smov [#allocation2]  }
  0x23   : > { %p504_p2 = scmp.ne.s32.totalorder %s701_s8, %s503_s28  ;;  %s508_s30 = sshll.u32 %s602_s29, 4  ;;  %s509_s30 = int_to_ptr.vmem [resolvable:$false] %s508_s30 }
  0x24   : > { %s510_s4 = scalar_lea.vmem %s509_s30, 512  ;;  %p511_p9 = scmp.lt.s32.totalorder %s701_s8, %s509_s30 }
  0x25   : > { %p506_p5 = pnand %p504_p2, %p490_p3  ;;  %p512_p4 = scmp.lt.s32.totalorder %s510_s4, %s503_s28 }
  0x27   : > { %p507_p11 = pneg %p506_p5  ;;  %p513_p7 = por %p512_p4, %p511_p9 }
  0x29   : > { %p514_p10 = pnand %p513_p7, %p507_p11 }
  0x2b   : > { %517 = shalt.err (!%p514_p10)
}
  0x2c   : > { %s603_s5 = smov 128   ;;  %s604_s7 = smov 8  }
  0x2d   : > { %426 = dma.hbm_to_vmem [thread:$0]  (!%p705_p0), %s699_s6, 256, %s701_s8, %s710_s10, %s603_s5, %s603_s5, %s604_s7  }
  0x2e   : > { %p173_p12 = scmp.lt.s32.totalorder %s600_s17, 3  ;;  %p820_p1 = scmp.ge.s32.totalorder %s600_s17, 1 }
  0x30   : > { %p174_p3 = pnand %p820_p1, %p173_p12 }
  0x31   : > { %s742_s11 = sand.u32 (!%p174_p3), 1, %s584_s13  }
  0x32   : > { %177 = sbr.rel (%p174_p3) target bundleno = 296 (0x128), region = 32  ;;  %s398_s18 = sshll.u32 (!%p174_p3), %s742_s11, 4 }
  0x33   : > { %s180_s19 = scalar_lea.sflag (!%p174_p3), [#allocation3], %s742_s11  ;;  %s183_s21 = scalar_lea.vmem (!%p174_p3), [#allocation2], %s398_s18 }
  0x39   : > { %571 = dma.done.wait (%p677_p8), %s180_s19, 256  }
  0x3a   : > { %573 = vsyncadd (%p677_p8), %s180_s19, 4294967040  ;;  %v605_v0 = vmov 0.0|0.0   ;;  %vm606_vm0 = vmmov 0   ;;  %v607_v1 = vmov 0.0   ;;  %v608_v2 = vmov 0   ;;  %v207_v3 = vld [vmem:[%s183_s21] sm:$0xff] }
  0x3b   : > { %416 = vmatprep.subr.bf16.mxu0 %v605_v0  ;;  %413 = vmatprep.mubr.msk.f32.mxu0 %vm606_vm0, %v607_v1  ;;  %v208_v4 = vld [vmem:[%s183_s21 + $0x8] sm:$0xff]  ;;  %v209_v6 = vld [vmem:[%s812_s2] sm:$0xff]  ;;  %vm215_vm1 = vcmask 130048   ;;  %s399_s10 = sshll.u32 %s742_s11, 3  ;;  %s402_s22 = sshll.u32 %s592_s15, 7  ;;  %vm292_vm3 = vcmask 523264  }
  0x3c   : > { %487 = vset.pattern.permute.xlu0 %v608_v2  ;;  %v417_v5 = vpack.c.bf16 %v208_v4, %v207_v3  ;;  %v206_v7 = vld [vmem:[%s811_s1] sm:$0xff]  ;;  %s205_s23 = scalar_lea.vmem [#allocation5], %s399_s10  ;;  %s761_s4 = scalar_lea.hbm %s813_s3, %s402_s22 }
  0x3d   : > { %212 = vperm.xlu0 %487, %v209_v6   ;;  %s309_s28 = sshll.u32 %s205_s23, 4  ;;  %s295_s5 = scalar_lea.sflag [#allocation4], %s742_s11  ;;  %s763_s28 = int_to_ptr.vmem [resolvable:$true] %s309_s28 }
  0x3e   : > { %418 = vmatpush3.bf16.msra.mxu0 %v417_v5  ;;  %s518_s7 = scalar_lea.vmem %s763_s28, 128  ;;  %p821_p9 = scmp.ne.s32.totalorder %s817_s25, 0 }
  0x3f   : > { %p519_p8 = scmp.ne.s32.totalorder %s763_s28, %s518_s7  ;;  %s609_s15 = smov [#allocation5]  }
  0x40   : > { %s522_s18 = sshll.u32 %s609_s15, 4  ;;  %s523_s18 = int_to_ptr.vmem [resolvable:$false] %s522_s18 }
  0x41   : > { %414 = vmatmul.mubr.msk.f32.vlgmr.msra.gmra.mrb[0].mxu0 %vm215_vm1, %v206_v7  ;;  %p520_p11 = pnand %p519_p8, %p821_p9  ;;  %s524_s19 = scalar_lea.vmem %s523_s18, 256 }
  0x42   : > { %p525_p6 = scmp.lt.s32.totalorder %s763_s28, %s523_s18  ;;  %p526_p13 = scmp.lt.s32.totalorder %s524_s19, %s518_s7 }
  0x43   : > { %p521_p0 = pneg %p520_p11 }
  0x44   : > { %p527_p2 = por %p526_p13, %p525_p6 }
  0x46   : > { %p528_p5 = pnand %p527_p2, %p521_p0 }
  0xbc   : > { %v213_v8 = vpop.permute.xlu0 %212 }
 0x114   : > { %v285_v9 = vpop.f32.mrb[0].mxu0 }
 0x115   : > { %v286_v10 = vadd.f32 %v285_v9, %v213_v8  ;;  %v415_v11 = vpop.f32.mrb[1].mxu0 }
 0x117   : > { %vm289_vm2 = vcmp.gt.f32.partialorder %v286_v10, 0.0  ;;  %v290_v12 = vmul.f32 0.1, %v286_v10 }
 0x119   : > { %v291_v13 = vsel %vm289_vm2, %v286_v10, %v290_v12 }
 0x11a   : > { %293 = vst.msk [vmem:[%s205_s23] sm:$0xff] %vm292_vm3, %v291_v13 }
 0x11b   : > { %531 = shalt.err (!%p528_p5)
}
 0x11c   : > { %s532_s11 = scalar_lea.hbm %s761_s4, 128  ;;  %s536_s8 = scalar_lea.hbm %s813_s3, 256 }
 0x11d   : > { %p533_p4 = scmp.ne.s32.totalorder %s761_s4, %s532_s11  ;;  %p537_p12 = scmp.lt.u32.totalorder %s761_s4, %s813_s3 }
 0x11e   : > { %p538_p1 = scmp.lt.u32.totalorder %s536_s8, %s532_s11  ;;  %p540_p8 = scmp.lt.u32.totalorder %s532_s11, %s761_s4 }
 0x11f   : > { %p534_p7 = pnand %p533_p4, %p821_p9 }
 0x120   : > { %p539_p3 = por %p538_p1, %p537_p12 }
 0x121   : > { %p535_p10 = pneg %p534_p7 }
 0x122   : > { %p541_p11 = por %p540_p8, %p539_p3 }
 0x124   : > { %p542_p0 = pnand %p541_p11, %p535_p10 }
 0x126   : > { %545 = shalt.err (!%p542_p0)
}
 0x127   : > { %421 = dma.vmem_to_hbm [thread:$0]  (%p821_p9), %s763_s28, 128, %s761_s4, %s295_s5  }
 0x128 PF: > { %s321_s10 = sand.u32 1, %s580_s12   ;;  %p822_p6 = scmp.ne.s32.totalorder %s818_s27, 0 }
 0x129   : > { %p823_p13 = scmp.ge.s32.totalorder %s600_s17, 2  ;;  %s322_s22 = scalar_lea.sflag [#allocation4], %s321_s10 }
 0x12b   : > { %p428_p2 = pnand %p823_p13, %p822_p6 }
 0x12d   : > { %575 = dma.done.wait (!%p428_p2), %s322_s22, 128  }
 0x12e   : > { %577 = vsyncadd (!%p428_p2), %s322_s22, 4294967168  ;;  %s19_s17 = sadd.s32 1, %s600_s17   ;;  %s824_s12 = smov %s584_s13 }
 0x12f   : > { %p16_p5 = scmp.ge.s32.totalorder %s19_s17, 4   ;;  %s825_s13 = smov %s588_s14 }
 0x130   : > { %s826_s14 = smov %s686_s26  ;;  %s827_s15 = smov %s596_s16 }
 0x131   : > { %s828_s16 = smov %s830_s20  ;;  %18 = sbr.rel (!%p16_p5) target bundleno = 6 (0x6), region = 77 }
 0x138   :  { %327 = vsyncpa [#allocation3], 1 }
 0x139   :  { %329 = vsyncpa [#allocation3 + $0x1], 1 }
 0x13a   :  { %330 = vsyncpa [#allocation4], 1 }
 0x13b   :  { %332 = vsyncpa [#allocation4 + $0x1], 1 }

</bundles_post_ra>
